<compile_context>
chip_gen: v5e
topology: v5e:2x2
jax: 0.10.0
libtpu: 0.0.40
codegen_flags: <defaults>
</compile_context>

<pallas_src>
import functools

import jax
import jax.numpy as jnp
from jax import lax
from jax.experimental import pallas as pl
from jax.experimental.pallas import tpu as pltpu


def _round_up(n, m):
    return ((n + m - 1) // m) * m


def lstm_classifier_kernel(x_ref, wih_ref, whh_ref, b_ref, wout_ref, bout_ref,
                           out_ref, gx_scr, *, seq_len, hidden_dim,
                           num_labels):
    """Full LSTM over time + hidden2label + log_softmax, single program.

    x_ref:    (S*BP, E)   float32  (time/batch flattened, batch padded)
    wih_ref:  (E,  GP)    float32  packed-gate W_ih.T, gate order [i,f,o,g]
    whh_ref:  (H,  GP)    float32  packed-gate W_hh.T, gate order [i,f,o,g]
    b_ref:    (1,  GP)    float32  b_ih + b_hh, packed/reordered
    wout_ref: (H,  LP)    float32  padded W_out.T
    bout_ref: (1,  LP)    float32  padded b_out
    out_ref:  (BP, LP)    float32  log-probabilities (lane-dense)
    gx_scr:   (S*BP, GP)  float32  scratch: precomputed input projection
    """
    BP = out_ref.shape[0]
    GP = whh_ref.shape[1]
    H = hidden_dim

    # ---- Prologue: hoisted input projection (one matmul for all timesteps),
    # bias folded in. Off the serial recurrence path.
    gx_scr[...] = (
        jnp.dot(x_ref[...], wih_ref[...], preferred_element_type=jnp.float32)
        + b_ref[...]
    )

    # ---- Loop invariants hoisted (JAX does not CSE broadcast_in_dim).
    whh = whh_ref[...]                                    # (H, GP)
    lane = lax.broadcasted_iota(jnp.int32, (BP, GP), 1)
    sig_lanes = lane < 3 * H      # [i, f, o) lanes -> sigmoid; [g) -> tanh

    def step(row, h, c):
        gates = (jnp.dot(h, whh, preferred_element_type=jnp.float32)
                 + gx_scr[pl.ds(row, BP), :])             # (BP, GP)
        # sigmoid(x) = 0.5*tanh(0.5*x) + 0.5: a single EUP tanh pass over the
        # packed gates vreg covers i/f/o (sigmoid) and g (tanh) together.
        pre = jnp.where(sig_lanes, 0.5 * gates, gates)
        th = jnp.tanh(pre)
        act = jnp.where(sig_lanes, 0.5 * th + 0.5, th)
        i_g = act[:, 0 * H:1 * H]
        f_g = act[:, 1 * H:2 * H]
        o_g = act[:, 2 * H:3 * H]
        g_g = act[:, 3 * H:4 * H]
        c_new = f_g * c + i_g * g_g
        h_new = o_g * jnp.tanh(c_new)
        return h_new, c_new

    # PyTorch init_hidden(): zeros.
    h = jnp.zeros((BP, H), jnp.float32)
    c = jnp.zeros((BP, H), jnp.float32)

    if seq_len <= 16:
        # Tiny static S: full unroll, h/c stay in vregs, no loop overhead.
        for t in range(seq_len):
            h, c = step(t * BP, h, c)
    else:
        # Larger S: bounded-unroll fori_loop caps vreg pressure / compile time.
        def body(t, carry):
            hh, cc = carry
            row = pl.multiple_of(t * BP, BP)
            return step(row, hh, cc)
        h, c = lax.fori_loop(0, seq_len, body, (h, c), unroll=4)

    # ---- Epilogue: hidden2label on last hidden state + log_softmax.
    y = (jnp.dot(h, wout_ref[...], preferred_element_type=jnp.float32)
         + bout_ref[...])                                 # (BP, LP)
    # Mask padded label lanes so they don't pollute the softmax normalizer
    # (keep this in f32: -1e30 would overflow bf16).
    lab_lane = lax.broadcasted_iota(jnp.int32, y.shape, 1)
    y = jnp.where(lab_lane < num_labels, y, jnp.float32(-1e30))
    m = jnp.max(y, axis=-1, keepdims=True)
    z = y - m
    lse = jnp.log(jnp.sum(jnp.exp(z), axis=-1, keepdims=True))
    out_ref[...] = z - lse


def _reorder_gates_ifgo_to_ifog(w):
    """Reorder PyTorch LSTM gate blocks [i, f, g, o] -> [i, f, o, g] (axis 0)."""
    i, f, g, o = jnp.split(w, 4, axis=0)
    return jnp.concatenate([i, f, o, g], axis=0)


def lstm_classifier_forward(sentence, params):
    """sentence: (S, B) int32 token ids. Returns (B, L) log-probs."""
    emb = params["embedding"]                                # (V, E)
    # TODO(synk): embedding gather (data-dependent) stays in XLA glue.
    x = jnp.take(emb, sentence, axis=0).astype(jnp.float32)  # (S, B, E)

    S, B, E = x.shape
    H = params["w_hh"].shape[1]                              # w_hh: (4H, H)
    L = params["w_out"].shape[0]                             # w_out: (L, H)
    G = 4 * H

    BP = _round_up(B, 8)        # sublane-aligned batch
    GP = _round_up(G, 128)      # lane-aligned *concatenated* gate axis
    LP = _round_up(L, 128)      # lane-dense output

    # Packed-gate weights (gate order [i, f, o, g]); only the 4H axis padded.
    # Padded gate lanes have zero weights/bias so they stay inert.
    w_ih_r = _reorder_gates_ifgo_to_ifog(params["w_ih"])     # (4H, E)
    w_hh_r = _reorder_gates_ifgo_to_ifog(params["w_hh"])     # (4H, H)
    b_r = _reorder_gates_ifgo_to_ifog(params["b_ih"] + params["b_hh"])  # (4H,)

    w_ih_pad = jnp.zeros((E, GP), jnp.float32).at[:, :G].set(w_ih_r.T)
    w_hh_pad = jnp.zeros((H, GP), jnp.float32).at[:, :G].set(w_hh_r.T)
    b_pad = jnp.zeros((1, GP), jnp.float32).at[0, :G].set(b_r)
    w_out_pad = jnp.zeros((H, LP), jnp.float32).at[:, :L].set(params["w_out"].T)
    b_out_pad = jnp.zeros((1, LP), jnp.float32).at[0, :L].set(params["b_out"])

    # Batch padded to BP; time/batch flattened so the hoisted input projection
    # is a single matmul inside the kernel.
    x_pad = jnp.zeros((S, BP, E), jnp.float32).at[:, :B, :].set(x)
    x2 = x_pad.reshape(S * BP, E)

    vmem = pl.BlockSpec(memory_space=pltpu.MemorySpace.VMEM)
    kernel = functools.partial(lstm_classifier_kernel,
                               seq_len=S, hidden_dim=H, num_labels=L)

    out = pl.pallas_call(
        kernel,
        out_shape=jax.ShapeDtypeStruct((BP, LP), jnp.float32),
        in_specs=[vmem] * 6,
        out_specs=vmem,
        scratch_shapes=[
            pltpu.VMEM((S * BP, GP), jnp.float32),   # precomputed gates_x
        ],
    )(x2, w_ih_pad, w_hh_pad, b_pad, w_out_pad, b_out_pad)

    return out[:B, :L]


def _reference_forward(sentence, params):
    """Pure-JAX reference matching PyTorch LSTMClassifier semantics."""
    x = jnp.take(params["embedding"], sentence, axis=0).astype(jnp.float32)
    S, B, E = x.shape
    H = params["w_hh"].shape[1]
    w_ih, w_hh = params["w_ih"], params["w_hh"]
    b = params["b_ih"] + params["b_hh"]

    def step(carry, x_t):
        h, c = carry
        gates = x_t @ w_ih.T + h @ w_hh.T + b
        i = jax.nn.sigmoid(gates[:, 0 * H:1 * H])
        f = jax.nn.sigmoid(gates[:, 1 * H:2 * H])
        g = jnp.tanh(gates[:, 2 * H:3 * H])
        o = jax.nn.sigmoid(gates[:, 3 * H:4 * H])
        c = f * c + i * g
        h = o * jnp.tanh(c)
        return (h, c), None

    h0 = jnp.zeros((B, H), jnp.float32)
    (h, _), _ = lax.scan(step, (h0, h0), x)
    y = h @ params["w_out"].T + params["b_out"]
    return jax.nn.log_softmax(y, axis=-1)


def init_params(key, vocab_size, embedding_dim, hidden_dim, label_size):
    ks = jax.random.split(key, 7)
    s = 0.1
    return {
        "embedding": jax.random.normal(ks[0], (vocab_size, embedding_dim),
                                       jnp.float32) * s,
        "w_ih": jax.random.normal(ks[1], (4 * hidden_dim, embedding_dim),
                                  jnp.float32) * s,
        "w_hh": jax.random.normal(ks[2], (4 * hidden_dim, hidden_dim),
                                  jnp.float32) * s,
        "b_ih": jax.random.normal(ks[3], (4 * hidden_dim,), jnp.float32) * s,
        "b_hh": jax.random.normal(ks[4], (4 * hidden_dim,), jnp.float32) * s,
        "w_out": jax.random.normal(ks[5], (label_size, hidden_dim),
                                   jnp.float32) * s,
        "b_out": jax.random.normal(ks[6], (label_size,), jnp.float32) * s,
    }


if __name__ == "__main__":
    # Small, module-consistent shapes
    seq_len, batch_size = 8, 4
    vocab_size, embedding_dim, hidden_dim, label_size = 50, 32, 32, 8

    key = jax.random.PRNGKey(0)
    k_tok, k_par = jax.random.split(key)

    params = init_params(k_par, vocab_size, embedding_dim, hidden_dim,
                         label_size)
    sentence = jax.random.randint(k_tok, (seq_len, batch_size), 0, vocab_size,
                                  dtype=jnp.int32)

    log_probs = lstm_classifier_forward(sentence, params)
    jax.block_until_ready(log_probs)

    assert log_probs.shape == (batch_size, label_size)
    # rows of log_softmax must exponentiate-sum to ~1
    assert jnp.allclose(jnp.sum(jnp.exp(log_probs), axis=-1), 1.0, atol=1e-4)
    # match the pure-JAX reference (PyTorch semantics)
    ref = _reference_forward(sentence, params)
    assert jnp.allclose(log_probs, ref, atol=1e-4, rtol=1e-4)

    print("KERNEL_OK")
</pallas_src>

<mosaic_0001>
module attributes {stable_mosaic.version = 11 : i64} {
  func.func @lstm_classifier_kernel(%arg0: memref<64x32xf32, #tpu.memory_space<vmem>>, %arg1: memref<32x128xf32, #tpu.memory_space<vmem>>, %arg2: memref<32x128xf32, #tpu.memory_space<vmem>>, %arg3: memref<1x128xf32, #tpu.memory_space<vmem>>, %arg4: memref<32x128xf32, #tpu.memory_space<vmem>>, %arg5: memref<1x128xf32, #tpu.memory_space<vmem>>, %arg6: memref<8x128xf32, #tpu.memory_space<vmem>>, %arg7: memref<64x128xf32, #tpu.memory_space<vmem>>) attributes {dimension_semantics = [], scalar_prefetch = 0 : i64, scratch_operands = 1 : i64, tpu.core_type = #tpu.core_type<tc>} {
    %c0 = arith.constant 0 : index
    %c0_0 = arith.constant 0 : index
    %0 = vector.load %arg0[%c0, %c0_0] : memref<64x32xf32, #tpu.memory_space<vmem>>, vector<64x32xf32>
    %c0_1 = arith.constant 0 : index
    %c0_2 = arith.constant 0 : index
    %1 = vector.load %arg1[%c0_1, %c0_2] : memref<32x128xf32, #tpu.memory_space<vmem>>, vector<32x128xf32>
    %cst = arith.constant dense<0.000000e+00> : vector<64x128xf32>
    %2 = tpu.matmul %0, %1, %cst {dimension_numbers = #tpu.dot_dimension_numbers<[1], [0], [0], [1], [0, 0, 1, 1], [], []>} : vector<64x32xf32>, vector<32x128xf32>, vector<64x128xf32> -> vector<64x128xf32>
    %c0_3 = arith.constant 0 : index
    %c0_4 = arith.constant 0 : index
    %3 = vector.load %arg3[%c0_3, %c0_4] : memref<1x128xf32, #tpu.memory_space<vmem>>, vector<1x128xf32>
    %4 = vector.broadcast %3 : vector<1x128xf32> to vector<64x128xf32>
    %5 = arith.addf %2, %4 : vector<64x128xf32>
    %c0_5 = arith.constant 0 : index
    %c0_6 = arith.constant 0 : index
    %6 = vector.load %arg7[%c0_5, %c0_6] : memref<64x128xf32, #tpu.memory_space<vmem>>, vector<64x128xf32>
    tpu.vector_store %arg7[%c0_5, %c0_6], %5 {strides = array<i32>} : memref<64x128xf32, #tpu.memory_space<vmem>>, vector<64x128xf32>,
    %c0_7 = arith.constant 0 : index
    %c0_8 = arith.constant 0 : index
    %7 = vector.load %arg2[%c0_7, %c0_8] : memref<32x128xf32, #tpu.memory_space<vmem>>, vector<32x128xf32>
    %8 = tpu.iota {dimensions = array<i32: 1>} : vector<8x128xi32>
    %c96_i32 = arith.constant 96 : i32
    %9 = vector.broadcast %c96_i32 : i32 to vector<8x128xi32>
    %10 = arith.cmpi slt, %8, %9 : vector<8x128xi32>
    %cst_9 = arith.constant 0.000000e+00 : f32
    %11 = vector.broadcast %cst_9 : f32 to vector<8x32xf32>
    %cst_10 = arith.constant 0.000000e+00 : f32
    %12 = vector.broadcast %cst_10 : f32 to vector<8x32xf32>
    %cst_11 = arith.constant dense<0.000000e+00> : vector<8x128xf32>
    %13 = tpu.matmul %11, %7, %cst_11 {dimension_numbers = #tpu.dot_dimension_numbers<[1], [0], [0], [1], [0, 0, 1, 1], [], []>} : vector<8x32xf32>, vector<32x128xf32>, vector<8x128xf32> -> vector<8x128xf32>
    %c0_12 = arith.constant 0 : index
    %c0_13 = arith.constant 0 : index
    %14 = vector.load %arg7[%c0_12, %c0_13] : memref<64x128xf32, #tpu.memory_space<vmem>>, vector<8x128xf32>
    %15 = arith.addf %13, %14 : vector<8x128xf32>
    %cst_14 = arith.constant 5.000000e-01 : f32
    %16 = vector.broadcast %cst_14 : f32 to vector<8x128xf32>
    %17 = arith.mulf %16, %15 : vector<8x128xf32>
    %18 = arith.select %10, %17, %15 : vector<8x128xi1>, vector<8x128xf32>
    %19 = math.tanh %18 : vector<8x128xf32>
    %cst_15 = arith.constant 5.000000e-01 : f32
    %20 = vector.broadcast %cst_15 : f32 to vector<8x128xf32>
    %21 = arith.mulf %20, %19 : vector<8x128xf32>
    %cst_16 = arith.constant 5.000000e-01 : f32
    %22 = vector.broadcast %cst_16 : f32 to vector<8x128xf32>
    %23 = arith.addf %21, %22 : vector<8x128xf32>
    %24 = arith.select %10, %23, %19 : vector<8x128xi1>, vector<8x128xf32>
    %25 = vector.extract_strided_slice %24 {offsets = [0, 0], sizes = [8, 32], strides = [1, 1]} : vector<8x128xf32> to vector<8x32xf32>
    %26 = vector.extract_strided_slice %24 {offsets = [0, 32], sizes = [8, 32], strides = [1, 1]} : vector<8x128xf32> to vector<8x32xf32>
    %27 = vector.extract_strided_slice %24 {offsets = [0, 64], sizes = [8, 32], strides = [1, 1]} : vector<8x128xf32> to vector<8x32xf32>
    %28 = vector.extract_strided_slice %24 {offsets = [0, 96], sizes = [8, 32], strides = [1, 1]} : vector<8x128xf32> to vector<8x32xf32>
    %29 = arith.mulf %26, %12 : vector<8x32xf32>
    %30 = arith.mulf %25, %28 : vector<8x32xf32>
    %31 = arith.addf %29, %30 : vector<8x32xf32>
    %32 = math.tanh %31 : vector<8x32xf32>
    %33 = arith.mulf %27, %32 : vector<8x32xf32>
    %cst_17 = arith.constant dense<0.000000e+00> : vector<8x128xf32>
    %34 = tpu.matmul %33, %7, %cst_17 {dimension_numbers = #tpu.dot_dimension_numbers<[1], [0], [0], [1], [0, 0, 1, 1], [], []>} : vector<8x32xf32>, vector<32x128xf32>, vector<8x128xf32> -> vector<8x128xf32>
    %c8 = arith.constant 8 : index
    %c0_18 = arith.constant 0 : index
    %35 = vector.load %arg7[%c8, %c0_18] : memref<64x128xf32, #tpu.memory_space<vmem>>, vector<8x128xf32>
    %36 = arith.addf %34, %35 : vector<8x128xf32>
    %cst_19 = arith.constant 5.000000e-01 : f32
    %37 = vector.broadcast %cst_19 : f32 to vector<8x128xf32>
    %38 = arith.mulf %37, %36 : vector<8x128xf32>
    %39 = arith.select %10, %38, %36 : vector<8x128xi1>, vector<8x128xf32>
    %40 = math.tanh %39 : vector<8x128xf32>
    %cst_20 = arith.constant 5.000000e-01 : f32
    %41 = vector.broadcast %cst_20 : f32 to vector<8x128xf32>
    %42 = arith.mulf %41, %40 : vector<8x128xf32>
    %cst_21 = arith.constant 5.000000e-01 : f32
    %43 = vector.broadcast %cst_21 : f32 to vector<8x128xf32>
    %44 = arith.addf %42, %43 : vector<8x128xf32>
    %45 = arith.select %10, %44, %40 : vector<8x128xi1>, vector<8x128xf32>
    %46 = vector.extract_strided_slice %45 {offsets = [0, 0], sizes = [8, 32], strides = [1, 1]} : vector<8x128xf32> to vector<8x32xf32>
    %47 = vector.extract_strided_slice %45 {offsets = [0, 32], sizes = [8, 32], strides = [1, 1]} : vector<8x128xf32> to vector<8x32xf32>
    %48 = vector.extract_strided_slice %45 {offsets = [0, 64], sizes = [8, 32], strides = [1, 1]} : vector<8x128xf32> to vector<8x32xf32>
    %49 = vector.extract_strided_slice %45 {offsets = [0, 96], sizes = [8, 32], strides = [1, 1]} : vector<8x128xf32> to vector<8x32xf32>
    %50 = arith.mulf %47, %31 : vector<8x32xf32>
    %51 = arith.mulf %46, %49 : vector<8x32xf32>
    %52 = arith.addf %50, %51 : vector<8x32xf32>
    %53 = math.tanh %52 : vector<8x32xf32>
    %54 = arith.mulf %48, %53 : vector<8x32xf32>
    %cst_22 = arith.constant dense<0.000000e+00> : vector<8x128xf32>
    %55 = tpu.matmul %54, %7, %cst_22 {dimension_numbers = #tpu.dot_dimension_numbers<[1], [0], [0], [1], [0, 0, 1, 1], [], []>} : vector<8x32xf32>, vector<32x128xf32>, vector<8x128xf32> -> vector<8x128xf32>
    %c16 = arith.constant 16 : index
    %c0_23 = arith.constant 0 : index
    %56 = vector.load %arg7[%c16, %c0_23] : memref<64x128xf32, #tpu.memory_space<vmem>>, vector<8x128xf32>
    %57 = arith.addf %55, %56 : vector<8x128xf32>
    %cst_24 = arith.constant 5.000000e-01 : f32
    %58 = vector.broadcast %cst_24 : f32 to vector<8x128xf32>
    %59 = arith.mulf %58, %57 : vector<8x128xf32>
    %60 = arith.select %10, %59, %57 : vector<8x128xi1>, vector<8x128xf32>
    %61 = math.tanh %60 : vector<8x128xf32>
    %cst_25 = arith.constant 5.000000e-01 : f32
    %62 = vector.broadcast %cst_25 : f32 to vector<8x128xf32>
    %63 = arith.mulf %62, %61 : vector<8x128xf32>
    %cst_26 = arith.constant 5.000000e-01 : f32
    %64 = vector.broadcast %cst_26 : f32 to vector<8x128xf32>
    %65 = arith.addf %63, %64 : vector<8x128xf32>
    %66 = arith.select %10, %65, %61 : vector<8x128xi1>, vector<8x128xf32>
    %67 = vector.extract_strided_slice %66 {offsets = [0, 0], sizes = [8, 32], strides = [1, 1]} : vector<8x128xf32> to vector<8x32xf32>
    %68 = vector.extract_strided_slice %66 {offsets = [0, 32], sizes = [8, 32], strides = [1, 1]} : vector<8x128xf32> to vector<8x32xf32>
    %69 = vector.extract_strided_slice %66 {offsets = [0, 64], sizes = [8, 32], strides = [1, 1]} : vector<8x128xf32> to vector<8x32xf32>
    %70 = vector.extract_strided_slice %66 {offsets = [0, 96], sizes = [8, 32], strides = [1, 1]} : vector<8x128xf32> to vector<8x32xf32>
    %71 = arith.mulf %68, %52 : vector<8x32xf32>
    %72 = arith.mulf %67, %70 : vector<8x32xf32>
    %73 = arith.addf %71, %72 : vector<8x32xf32>
    %74 = math.tanh %73 : vector<8x32xf32>
    %75 = arith.mulf %69, %74 : vector<8x32xf32>
    %cst_27 = arith.constant dense<0.000000e+00> : vector<8x128xf32>
    %76 = tpu.matmul %75, %7, %cst_27 {dimension_numbers = #tpu.dot_dimension_numbers<[1], [0], [0], [1], [0, 0, 1, 1], [], []>} : vector<8x32xf32>, vector<32x128xf32>, vector<8x128xf32> -> vector<8x128xf32>
    %c24 = arith.constant 24 : index
    %c0_28 = arith.constant 0 : index
    %77 = vector.load %arg7[%c24, %c0_28] : memref<64x128xf32, #tpu.memory_space<vmem>>, vector<8x128xf32>
    %78 = arith.addf %76, %77 : vector<8x128xf32>
    %cst_29 = arith.constant 5.000000e-01 : f32
    %79 = vector.broadcast %cst_29 : f32 to vector<8x128xf32>
    %80 = arith.mulf %79, %78 : vector<8x128xf32>
    %81 = arith.select %10, %80, %78 : vector<8x128xi1>, vector<8x128xf32>
    %82 = math.tanh %81 : vector<8x128xf32>
    %cst_30 = arith.constant 5.000000e-01 : f32
    %83 = vector.broadcast %cst_30 : f32 to vector<8x128xf32>
    %84 = arith.mulf %83, %82 : vector<8x128xf32>
    %cst_31 = arith.constant 5.000000e-01 : f32
    %85 = vector.broadcast %cst_31 : f32 to vector<8x128xf32>
    %86 = arith.addf %84, %85 : vector<8x128xf32>
    %87 = arith.select %10, %86, %82 : vector<8x128xi1>, vector<8x128xf32>
    %88 = vector.extract_strided_slice %87 {offsets = [0, 0], sizes = [8, 32], strides = [1, 1]} : vector<8x128xf32> to vector<8x32xf32>
    %89 = vector.extract_strided_slice %87 {offsets = [0, 32], sizes = [8, 32], strides = [1, 1]} : vector<8x128xf32> to vector<8x32xf32>
    %90 = vector.extract_strided_slice %87 {offsets = [0, 64], sizes = [8, 32], strides = [1, 1]} : vector<8x128xf32> to vector<8x32xf32>
    %91 = vector.extract_strided_slice %87 {offsets = [0, 96], sizes = [8, 32], strides = [1, 1]} : vector<8x128xf32> to vector<8x32xf32>
    %92 = arith.mulf %89, %73 : vector<8x32xf32>
    %93 = arith.mulf %88, %91 : vector<8x32xf32>
    %94 = arith.addf %92, %93 : vector<8x32xf32>
    %95 = math.tanh %94 : vector<8x32xf32>
    %96 = arith.mulf %90, %95 : vector<8x32xf32>
    %cst_32 = arith.constant dense<0.000000e+00> : vector<8x128xf32>
    %97 = tpu.matmul %96, %7, %cst_32 {dimension_numbers = #tpu.dot_dimension_numbers<[1], [0], [0], [1], [0, 0, 1, 1], [], []>} : vector<8x32xf32>, vector<32x128xf32>, vector<8x128xf32> -> vector<8x128xf32>
    %c32 = arith.constant 32 : index
    %c0_33 = arith.constant 0 : index
    %98 = vector.load %arg7[%c32, %c0_33] : memref<64x128xf32, #tpu.memory_space<vmem>>, vector<8x128xf32>
    %99 = arith.addf %97, %98 : vector<8x128xf32>
    %cst_34 = arith.constant 5.000000e-01 : f32
    %100 = vector.broadcast %cst_34 : f32 to vector<8x128xf32>
    %101 = arith.mulf %100, %99 : vector<8x128xf32>
    %102 = arith.select %10, %101, %99 : vector<8x128xi1>, vector<8x128xf32>
    %103 = math.tanh %102 : vector<8x128xf32>
    %cst_35 = arith.constant 5.000000e-01 : f32
    %104 = vector.broadcast %cst_35 : f32 to vector<8x128xf32>
    %105 = arith.mulf %104, %103 : vector<8x128xf32>
    %cst_36 = arith.constant 5.000000e-01 : f32
    %106 = vector.broadcast %cst_36 : f32 to vector<8x128xf32>
    %107 = arith.addf %105, %106 : vector<8x128xf32>
    %108 = arith.select %10, %107, %103 : vector<8x128xi1>, vector<8x128xf32>
    %109 = vector.extract_strided_slice %108 {offsets = [0, 0], sizes = [8, 32], strides = [1, 1]} : vector<8x128xf32> to vector<8x32xf32>
    %110 = vector.extract_strided_slice %108 {offsets = [0, 32], sizes = [8, 32], strides = [1, 1]} : vector<8x128xf32> to vector<8x32xf32>
    %111 = vector.extract_strided_slice %108 {offsets = [0, 64], sizes = [8, 32], strides = [1, 1]} : vector<8x128xf32> to vector<8x32xf32>
    %112 = vector.extract_strided_slice %108 {offsets = [0, 96], sizes = [8, 32], strides = [1, 1]} : vector<8x128xf32> to vector<8x32xf32>
    %113 = arith.mulf %110, %94 : vector<8x32xf32>
    %114 = arith.mulf %109, %112 : vector<8x32xf32>
    %115 = arith.addf %113, %114 : vector<8x32xf32>
    %116 = math.tanh %115 : vector<8x32xf32>
    %117 = arith.mulf %111, %116 : vector<8x32xf32>
    %cst_37 = arith.constant dense<0.000000e+00> : vector<8x128xf32>
    %118 = tpu.matmul %117, %7, %cst_37 {dimension_numbers = #tpu.dot_dimension_numbers<[1], [0], [0], [1], [0, 0, 1, 1], [], []>} : vector<8x32xf32>, vector<32x128xf32>, vector<8x128xf32> -> vector<8x128xf32>
    %c40 = arith.constant 40 : index
    %c0_38 = arith.constant 0 : index
    %119 = vector.load %arg7[%c40, %c0_38] : memref<64x128xf32, #tpu.memory_space<vmem>>, vector<8x128xf32>
    %120 = arith.addf %118, %119 : vector<8x128xf32>
    %cst_39 = arith.constant 5.000000e-01 : f32
    %121 = vector.broadcast %cst_39 : f32 to vector<8x128xf32>
    %122 = arith.mulf %121, %120 : vector<8x128xf32>
    %123 = arith.select %10, %122, %120 : vector<8x128xi1>, vector<8x128xf32>
    %124 = math.tanh %123 : vector<8x128xf32>
    %cst_40 = arith.constant 5.000000e-01 : f32
    %125 = vector.broadcast %cst_40 : f32 to vector<8x128xf32>
    %126 = arith.mulf %125, %124 : vector<8x128xf32>
    %cst_41 = arith.constant 5.000000e-01 : f32
    %127 = vector.broadcast %cst_41 : f32 to vector<8x128xf32>
    %128 = arith.addf %126, %127 : vector<8x128xf32>
    %129 = arith.select %10, %128, %124 : vector<8x128xi1>, vector<8x128xf32>
    %130 = vector.extract_strided_slice %129 {offsets = [0, 0], sizes = [8, 32], strides = [1, 1]} : vector<8x128xf32> to vector<8x32xf32>
    %131 = vector.extract_strided_slice %129 {offsets = [0, 32], sizes = [8, 32], strides = [1, 1]} : vector<8x128xf32> to vector<8x32xf32>
    %132 = vector.extract_strided_slice %129 {offsets = [0, 64], sizes = [8, 32], strides = [1, 1]} : vector<8x128xf32> to vector<8x32xf32>
    %133 = vector.extract_strided_slice %129 {offsets = [0, 96], sizes = [8, 32], strides = [1, 1]} : vector<8x128xf32> to vector<8x32xf32>
    %134 = arith.mulf %131, %115 : vector<8x32xf32>
    %135 = arith.mulf %130, %133 : vector<8x32xf32>
    %136 = arith.addf %134, %135 : vector<8x32xf32>
    %137 = math.tanh %136 : vector<8x32xf32>
    %138 = arith.mulf %132, %137 : vector<8x32xf32>
    %cst_42 = arith.constant dense<0.000000e+00> : vector<8x128xf32>
    %139 = tpu.matmul %138, %7, %cst_42 {dimension_numbers = #tpu.dot_dimension_numbers<[1], [0], [0], [1], [0, 0, 1, 1], [], []>} : vector<8x32xf32>, vector<32x128xf32>, vector<8x128xf32> -> vector<8x128xf32>
    %c48 = arith.constant 48 : index
    %c0_43 = arith.constant 0 : index
    %140 = vector.load %arg7[%c48, %c0_43] : memref<64x128xf32, #tpu.memory_space<vmem>>, vector<8x128xf32>
    %141 = arith.addf %139, %140 : vector<8x128xf32>
    %cst_44 = arith.constant 5.000000e-01 : f32
    %142 = vector.broadcast %cst_44 : f32 to vector<8x128xf32>
    %143 = arith.mulf %142, %141 : vector<8x128xf32>
    %144 = arith.select %10, %143, %141 : vector<8x128xi1>, vector<8x128xf32>
    %145 = math.tanh %144 : vector<8x128xf32>
    %cst_45 = arith.constant 5.000000e-01 : f32
    %146 = vector.broadcast %cst_45 : f32 to vector<8x128xf32>
    %147 = arith.mulf %146, %145 : vector<8x128xf32>
    %cst_46 = arith.constant 5.000000e-01 : f32
    %148 = vector.broadcast %cst_46 : f32 to vector<8x128xf32>
    %149 = arith.addf %147, %148 : vector<8x128xf32>
    %150 = arith.select %10, %149, %145 : vector<8x128xi1>, vector<8x128xf32>
    %151 = vector.extract_strided_slice %150 {offsets = [0, 0], sizes = [8, 32], strides = [1, 1]} : vector<8x128xf32> to vector<8x32xf32>
    %152 = vector.extract_strided_slice %150 {offsets = [0, 32], sizes = [8, 32], strides = [1, 1]} : vector<8x128xf32> to vector<8x32xf32>
    %153 = vector.extract_strided_slice %150 {offsets = [0, 64], sizes = [8, 32], strides = [1, 1]} : vector<8x128xf32> to vector<8x32xf32>
    %154 = vector.extract_strided_slice %150 {offsets = [0, 96], sizes = [8, 32], strides = [1, 1]} : vector<8x128xf32> to vector<8x32xf32>
    %155 = arith.mulf %152, %136 : vector<8x32xf32>
    %156 = arith.mulf %151, %154 : vector<8x32xf32>
    %157 = arith.addf %155, %156 : vector<8x32xf32>
    %158 = math.tanh %157 : vector<8x32xf32>
    %159 = arith.mulf %153, %158 : vector<8x32xf32>
    %cst_47 = arith.constant dense<0.000000e+00> : vector<8x128xf32>
    %160 = tpu.matmul %159, %7, %cst_47 {dimension_numbers = #tpu.dot_dimension_numbers<[1], [0], [0], [1], [0, 0, 1, 1], [], []>} : vector<8x32xf32>, vector<32x128xf32>, vector<8x128xf32> -> vector<8x128xf32>
    %c56 = arith.constant 56 : index
    %c0_48 = arith.constant 0 : index
    %161 = vector.load %arg7[%c56, %c0_48] : memref<64x128xf32, #tpu.memory_space<vmem>>, vector<8x128xf32>
    %162 = arith.addf %160, %161 : vector<8x128xf32>
    %cst_49 = arith.constant 5.000000e-01 : f32
    %163 = vector.broadcast %cst_49 : f32 to vector<8x128xf32>
    %164 = arith.mulf %163, %162 : vector<8x128xf32>
    %165 = arith.select %10, %164, %162 : vector<8x128xi1>, vector<8x128xf32>
    %166 = math.tanh %165 : vector<8x128xf32>
    %cst_50 = arith.constant 5.000000e-01 : f32
    %167 = vector.broadcast %cst_50 : f32 to vector<8x128xf32>
    %168 = arith.mulf %167, %166 : vector<8x128xf32>
    %cst_51 = arith.constant 5.000000e-01 : f32
    %169 = vector.broadcast %cst_51 : f32 to vector<8x128xf32>
    %170 = arith.addf %168, %169 : vector<8x128xf32>
    %171 = arith.select %10, %170, %166 : vector<8x128xi1>, vector<8x128xf32>
    %172 = vector.extract_strided_slice %171 {offsets = [0, 0], sizes = [8, 32], strides = [1, 1]} : vector<8x128xf32> to vector<8x32xf32>
    %173 = vector.extract_strided_slice %171 {offsets = [0, 32], sizes = [8, 32], strides = [1, 1]} : vector<8x128xf32> to vector<8x32xf32>
    %174 = vector.extract_strided_slice %171 {offsets = [0, 64], sizes = [8, 32], strides = [1, 1]} : vector<8x128xf32> to vector<8x32xf32>
    %175 = vector.extract_strided_slice %171 {offsets = [0, 96], sizes = [8, 32], strides = [1, 1]} : vector<8x128xf32> to vector<8x32xf32>
    %176 = arith.mulf %173, %157 : vector<8x32xf32>
    %177 = arith.mulf %172, %175 : vector<8x32xf32>
    %178 = arith.addf %176, %177 : vector<8x32xf32>
    %179 = math.tanh %178 : vector<8x32xf32>
    %180 = arith.mulf %174, %179 : vector<8x32xf32>
    %c0_52 = arith.constant 0 : index
    %c0_53 = arith.constant 0 : index
    %181 = vector.load %arg4[%c0_52, %c0_53] : memref<32x128xf32, #tpu.memory_space<vmem>>, vector<32x128xf32>
    %cst_54 = arith.constant dense<0.000000e+00> : vector<8x128xf32>
    %182 = tpu.matmul %180, %181, %cst_54 {dimension_numbers = #tpu.dot_dimension_numbers<[1], [0], [0], [1], [0, 0, 1, 1], [], []>} : vector<8x32xf32>, vector<32x128xf32>, vector<8x128xf32> -> vector<8x128xf32>
    %c0_55 = arith.constant 0 : index
    %c0_56 = arith.constant 0 : index
    %183 = vector.load %arg5[%c0_55, %c0_56] : memref<1x128xf32, #tpu.memory_space<vmem>>, vector<1x128xf32>
    %184 = vector.broadcast %183 : vector<1x128xf32> to vector<8x128xf32>
    %185 = arith.addf %182, %184 : vector<8x128xf32>
    %186 = tpu.iota {dimensions = array<i32: 1>} : vector<8x128xi32>
    %c8_i32 = arith.constant 8 : i32
    %187 = vector.broadcast %c8_i32 : i32 to vector<8x128xi32>
    %188 = arith.cmpi slt, %186, %187 : vector<8x128xi32>
    %cst_57 = arith.constant -1.000000e+30 : f32
    %189 = vector.broadcast %cst_57 : f32 to vector<8x128xf32>
    %190 = arith.select %188, %185, %189 : vector<8x128xi1>, vector<8x128xf32>
    %cst_58 = arith.constant dense<0xFF800000> : vector<8xf32>
    %191 = vector.multi_reduction <maximumf>, %190, %cst_58 [1] : vector<8x128xf32> to vector<8xf32>
    %192 = vector.shape_cast %191 : vector<8xf32> to vector<8x1xf32>
    %193 = vector.broadcast %192 : vector<8x1xf32> to vector<8x128xf32>
    %194 = arith.subf %190, %193 : vector<8x128xf32>
    %195 = math.exp %194 : vector<8x128xf32>
    %cst_59 = arith.constant dense<0.000000e+00> : vector<8xf32>
    %196 = vector.multi_reduction <add>, %195, %cst_59 [1] : vector<8x128xf32> to vector<8xf32>
    %197 = vector.shape_cast %196 : vector<8xf32> to vector<8x1xf32>
    %198 = math.log %197 : vector<8x1xf32>
    %199 = vector.broadcast %198 : vector<8x1xf32> to vector<8x128xf32>
    %200 = arith.subf %194, %199 : vector<8x128xf32>
    %c0_60 = arith.constant 0 : index
    %c0_61 = arith.constant 0 : index
    %201 = vector.load %arg6[%c0_60, %c0_61] : memref<8x128xf32, #tpu.memory_space<vmem>>, vector<8x128xf32>
    tpu.vector_store %arg6[%c0_60, %c0_61], %200 {strides = array<i32>} : memref<8x128xf32, #tpu.memory_space<vmem>>, vector<8x128xf32>,
    return
  }
}

</mosaic_0001>

<bundles_post_ra>
// kernel: tpu_custom_call.1
= control target key start
LH: loop header
LB: loop body
LE: loop exit
PB: predicated region body
PF: predicated region fallthrough
CT: control target
= control target key end

     0   :  { %s916_s0 = inlined_call_operand.vmem [shape: f32[64,32], index: 0, kind: input, shape index: {}]   ;;  %s917_s1 = inlined_call_operand.vmem [shape: f32[32,128], index: 1, kind: input, shape index: {}]   ;;  %s918_s2 = inlined_call_operand.vmem [shape: f32[32,128], index: 2, kind: input, shape index: {}]   ;;  %s919_s3 = inlined_call_operand.vmem [shape: f32[1,128], index: 3, kind: input, shape index: {}]   ;;  %s920_s4 = inlined_call_operand.vmem [shape: f32[32,128], index: 4, kind: input, shape index: {}]   ;;  %s921_s5 = inlined_call_operand.vmem [shape: f32[1,128], index: 5, kind: input, shape index: {}]   ;;  %s922_s6 = inlined_call_operand.hbm [shape: f32[8,128], index: 6, kind: output, shape index: {}]  }
   0x1   :  { %v35_v0 = vld [vmem:[%s917_s1 + $0x18] sm:$0xff]  ;;  %v34_v1 = vld [vmem:[%s917_s1 + $0x10] sm:$0xff]  ;;  %v33_v3 = vld [vmem:[%s917_s1 + $0x8] sm:$0xff] }
   0x2   :  { %589 = vmatpush.msra.mxu1 %v35_v0  ;;  %77 = vmatpush.msra.mxu0 %v35_v0  ;;  %v713_v2 = vld [vmem:[%s918_s2 + $0x18] sm:$0xff]  ;;  %v722_v4 = vld [vmem:[%s918_s2 + $0x10] sm:$0xff]  ;;  %v32_v5 = vld [vmem:[%s917_s1] sm:$0xff] }
   0x3   :  { %590 = vmatpush.msra.mxu2 %v35_v0  ;;  %235 = vmatpush.msra.mxu3 %v713_v2 }
   0x4   :  { %591 = vmatpush.msra.mxu1 %v34_v1  ;;  %78 = vmatpush.msra.mxu0 %v34_v1 }
   0x5   :  { %592 = vmatpush.msra.mxu2 %v34_v1  ;;  %236 = vmatpush.msra.mxu3 %v722_v4 }
   0x6   :  { %11 = vsyncpa [#allocation4], 0  ;;  %593 = vmatpush.msra.mxu1 %v33_v3  ;;  %v29_v6 = vld [vmem:[%s916_s0 + $0x28] sm:$0xff]  ;;  %vm40_vm0 = vcmask 261120   ;;  %79 = vmatpush.msra.mxu0 %v33_v3  ;;  %v24_v8 = vld [vmem:[%s916_s0] sm:$0xff]  ;;  %v665_v10 = vmov 0.0   ;;  %v118_v13 = vlaneseq }
   0x7   :  { %v734_v7 = vld [vmem:[%s918_s2 + $0x8] sm:$0xff]  ;;  %594 = vmatpush.msra.mxu2 %v33_v3  ;;  %v746_v9 = vld [vmem:[%s918_s2] sm:$0xff]  ;;  %v30_v31 = vld [vmem:[%s916_s0 + $0x30] sm:$0xff]  ;;  %s667_s21 = smov 64  }
   0x8   :  { %237 = vmatpush.msra.mxu3 %v734_v7  ;;  %595 = vmatpush.msra.mxu1 %v32_v5  ;;  %v773_v14 = vld [vmem:[%s919_s3] ss:$0 sm:$0xff]  ;;  %v776_v16 = vand.u32 127, %v118_v13  ;;  %s666_s3 = smov 32   ;;  %v31_v32 = vld [vmem:[%s916_s0 + $0x38] sm:$0xff]  ;;  %v25_v35 = vld [vmem:[%s916_s0 + $0x8] sm:$0xff] }
   0x9   :  { %80 = vmatpush.msra.mxu0 %v32_v5  ;;  %578 = vmatmul.msk.f32.vlgmr.msra.gmra.mxu1 %vm40_vm0, %v29_v6  ;;  %v26_v57 = vld [vmem:[%s916_s0 + $0x10] sm:$0xff] }
   0xa   :  { %573 = vmatmul.msk.f32.vlgmr.msra.gmra.mxu0 %vm40_vm0, %v24_v8  ;;  %137 = vmatpush.msrb.mxu1 %v713_v2  ;;  %vm120_vm1 = vcmp.lt.s32.totalorder %v776_v16, 96  ;;  %vm544_vm2 = vcmp.lt.s32.totalorder %v776_v16, 8 }
   0xb   :  { %596 = vmatpush.msra.mxu2 %v32_v5  ;;  %238 = vmatpush.msra.mxu3 %v746_v9 }
   0xc   :  { %138 = vmatpush.msrb.mxu1 %v722_v4  ;;  %579 = vmatmul.msk.f32.vlgmr.msra.gmra.mxu2 %vm40_vm0, %v30_v31 }
   0xd   :  { %186 = vmatpush.msrb.mxu2 %v713_v2  ;;  %382 = vmatpush.msrb.mxu3 %v713_v2 }
   0xe   :  { %139 = vmatpush.msrb.mxu1 %v734_v7 }
   0xf   :  { %187 = vmatpush.msrb.mxu2 %v722_v4  ;;  %383 = vmatpush.msrb.mxu3 %v722_v4 }
  0x10   :  { %140 = vmatpush.msrb.mxu1 %v746_v9 }
  0x11   :  { %188 = vmatpush.msrb.mxu2 %v734_v7  ;;  %384 = vmatpush.msrb.mxu3 %v734_v7 }
  0x12   :  { %141 = vmatmul.f32.vlgmr.msrb.gmra.mxu1 %v665_v10  ;;  %574 = vmatmul.msk.f32.gmra.mxu0 %vm40_vm0, %v25_v35 }
  0x13   :  { %189 = vmatpush.msrb.mxu2 %v746_v9  ;;  %284 = vmatpush.msra.mxu1 %v713_v2 }
  0x14   :  { %385 = vmatpush.msrb.mxu3 %v746_v9  ;;  %580 = vmatmul.msk.f32.gmra.mxu2 %vm40_vm0, %v31_v32 }
  0x15   :  { %285 = vmatpush.msra.mxu1 %v722_v4  ;;  %333 = vmatpush.msra.mxu2 %v713_v2 }
  0x17   :  { %286 = vmatpush.msra.mxu1 %v734_v7  ;;  %334 = vmatpush.msra.mxu2 %v722_v4 }
  0x19   :  { %287 = vmatpush.msra.mxu1 %v746_v9  ;;  %335 = vmatpush.msra.mxu2 %v734_v7 }
  0x1a   :  { %575 = vmatmul.msk.f32.gmra.mxu0 %vm40_vm0, %v26_v57 }
  0x1b   :  { %431 = vmatpush.msrb.mxu1 %v713_v2  ;;  %336 = vmatpush.msra.mxu2 %v746_v9 }
  0x1d   :  { %432 = vmatpush.msrb.mxu1 %v722_v4 }
  0x1f   :  { %433 = vmatpush.msrb.mxu1 %v734_v7 }
  0x21   :  { %434 = vmatpush.msrb.mxu1 %v746_v9 }
  0x86   :  { %v768_v11 = vpop.f32.mrf.mxu1 }
  0x87   :  { %v82_v12 = vpop.f32.mrf.mxu0 }
  0x88   :  { %v83_v15 = vadd.f32 %v773_v14, %v82_v12  ;;  %v27_v12 = vld [vmem:[%s916_s0 + $0x18] sm:$0xff] }
  0x89   :  { %576 = vmatmul.msk.f32.gmra.mxu0 %vm40_vm0, %v27_v12 }
  0x8f   :  { %v142_v17 = vpop.f32.mrf.mxu1  ;;  %v808_v37 = vpop.f32.mrf.mxu2 }
  0x90   :  { %v143_v18 = vadd.f32 %v142_v17, %v83_v15  ;;  %v85_v39 = vpop.f32.mrf.mxu0 }
  0x91   :  { %v86_v40 = vadd.f32 %v773_v14, %v85_v39 }
  0x92   :  { %v145_v19 = vmul.f32 0.5, %v143_v18 }
  0x94   :  { %v146_v20 = vsel %vm120_vm1, %v145_v19, %v143_v18 }
  0x95   :  { %603 = vtanh.f32 %v146_v20 }
  0x97   :  { %v810_v38 = vpop.f32.mrf.mxu2 }
  0x98   :  { %v88_v59 = vpop.f32.mrf.mxu0 }
  0x99   :  { %v89_v60 = vadd.f32 %v773_v14, %v88_v59  ;;  %v98_v59 = vadd.f32 %v773_v14, %v768_v11 }
  0x9b   :  { %v604_v21 = vpop.eup %603 }
  0x9c   :  { %v148_v22 = vmul.f32 0.5, %v604_v21 }
  0x9e   :  { %v149_v23 = vadd.f32 0.5, %v148_v22 }
  0xa0   :  { %v150_v24 = vsel %vm120_vm1, %v149_v23, %v604_v21 }
  0xa1   :  { %153 = vrot.lane.b32.xlu0 %v150_v24, %s666_s3  ;;  %v151_v27 = vmul.f32 0.0, %v150_v24 }
 0x106   :  { %v91_v18 = vpop.f32.mrf.mxu0 }
 0x107   :  { %v92_v19 = vadd.f32 %v773_v14, %v91_v18 }
 0x113   :  { %v154_v25 = vpop.permute.xlu0 %153 }
 0x114   :  { %v156_v26 = vmul.f32 %v154_v25, %v150_v24 }
 0x116   :  { %158 = vrot.lane.b32.xlu0 %v156_v26, %s666_s3 }
 0x188   :  { %v159_v28 = vpop.permute.xlu0 %158 }
 0x189   :  { %v161_v29 = vadd.f32 %v159_v28, %v151_v27 }
 0x18b   :  { %605 = vtanh.f32 %v161_v29 }
 0x191   :  { %v606_v30 = vpop.eup %605 }
 0x192   :  { %164 = vrot.lane.b32.xlu1 %v606_v30, %s666_s3 }
 0x204   :  { %v165_v33 = vpop.permute.xlu1 %164 }
 0x205   :  { %v167_v34 = vmul.f32 %v165_v33, %v150_v24 }
 0x207   :  { %170 = vrot.lane.b32.xlu1 %v167_v34, %s667_s21 }
 0x279   :  { %v171_v36 = vpop.permute.xlu1 %170 }
 0x27a   :  { %581 = vmatmul.msk.f32.vlgmr.msrb.gmra.mxu2 %vm40_vm0, %v171_v36  ;;  %v28_v36 = vld [vmem:[%s916_s0 + $0x20] sm:$0xff] }
 0x27b   :  { %480 = vmatpush.msrb.mxu2 %v713_v2  ;;  %577 = vmatmul.msk.f32.gmra.mxu0 %vm40_vm0, %v28_v36 }
 0x27d   :  { %481 = vmatpush.msrb.mxu2 %v722_v4 }
 0x27f   :  { %482 = vmatpush.msrb.mxu2 %v734_v7 }
 0x281   :  { %483 = vmatpush.msrb.mxu2 %v746_v9 }
 0x2fd   :  { %v191_v41 = vpop.f32.mrf.mxu2 }
 0x2fe   :  { %v192_v42 = vadd.f32 %v191_v41, %v86_v40  ;;  %v94_v40 = vpop.f32.mrf.mxu0 }
 0x2ff   :  { %v95_v41 = vadd.f32 %v773_v14, %v94_v40 }
 0x300   :  { %v194_v43 = vmul.f32 0.5, %v192_v42 }
 0x302   :  { %v195_v44 = vsel %vm120_vm1, %v194_v43, %v192_v42 }
 0x303   :  { %607 = vtanh.f32 %v195_v44 }
 0x309   :  { %v608_v45 = vpop.eup %607 }
 0x30a   :  { %v197_v46 = vmul.f32 0.5, %v608_v45 }
 0x30c   :  { %v198_v47 = vadd.f32 0.5, %v197_v46 }
 0x30e   :  { %v199_v48 = vsel %vm120_vm1, %v198_v47, %v608_v45 }
 0x30f   :  { %202 = vrot.lane.b32.xlu2 %v199_v48, %s666_s3  ;;  %v200_v51 = vmul.f32 %v199_v48, %v161_v29 }
 0x369   :  { %v203_v49 = vpop.permute.xlu2 %202 }
 0x36a   :  { %v205_v50 = vmul.f32 %v203_v49, %v199_v48 }
 0x36c   :  { %207 = vrot.lane.b32.xlu2 %v205_v50, %s666_s3 }
 0x3c6   :  { %v208_v52 = vpop.permute.xlu2 %207 }
 0x3c7   :  { %v210_v53 = vadd.f32 %v208_v52, %v200_v51 }
 0x3c9   :  { %609 = vtanh.f32 %v210_v53 }
 0x3cf   :  { %v610_v54 = vpop.eup %609 }
 0x3d0   :  { %213 = vrot.lane.b32.xlu0 %v610_v54, %s666_s3 }
 0x442   :  { %v214_v55 = vpop.permute.xlu0 %213 }
 0x443   :  { %v216_v56 = vmul.f32 %v214_v55, %v199_v48 }
 0x445   :  { %219 = vrot.lane.b32.xlu1 %v216_v56, %s667_s21 }
 0x4b7   :  { %v220_v58 = vpop.permute.xlu1 %219 }
 0x4b8   :  { %582 = vmatmul.msk.f32.vlgmr.msra.gmra.mxu3 %vm40_vm0, %v220_v58 }
 0x53b   :  { %v240_v61 = vpop.f32.mrf.mxu3 }
 0x53c   :  { %v241_v62 = vadd.f32 %v240_v61, %v89_v60 }
 0x53e   :  { %v243_v63 = vmul.f32 0.5, %v241_v62 }
 0x540   :  { %v244_v0 = vsel %vm120_vm1, %v243_v63, %v241_v62 }
 0x541   :  { %611 = vtanh.f32 %v244_v0 }
 0x547   :  { %v612_v1 = vpop.eup %611 }
 0x548   :  { %v246_v2 = vmul.f32 0.5, %v612_v1 }
 0x54a   :  { %v247_v3 = vadd.f32 0.5, %v246_v2 }
 0x54c   :  { %v248_v4 = vsel %vm120_vm1, %v247_v3, %v612_v1 }
 0x54d   :  { %251 = vrot.lane.b32.xlu2 %v248_v4, %s666_s3  ;;  %v249_v7 = vmul.f32 %v248_v4, %v210_v53 }
 0x5a7   :  { %v252_v5 = vpop.permute.xlu2 %251 }
 0x5a8   :  { %v254_v6 = vmul.f32 %v252_v5, %v248_v4 }
 0x5aa   :  { %256 = vrot.lane.b32.xlu0 %v254_v6, %s666_s3 }
 0x61c   :  { %v257_v8 = vpop.permute.xlu0 %256 }
 0x61d   :  { %v259_v9 = vadd.f32 %v257_v8, %v249_v7 }
 0x61f   :  { %613 = vtanh.f32 %v259_v9 }
 0x625   :  { %v614_v10 = vpop.eup %613 }
 0x626   :  { %262 = vrot.lane.b32.xlu1 %v614_v10, %s666_s3 }
 0x698   :  { %v263_v13 = vpop.permute.xlu1 %262 }
 0x699   :  { %v265_v15 = vmul.f32 %v263_v13, %v248_v4  ;;  %v101_v13 = vadd.f32 %v773_v14, %v808_v37 }
 0x69b   :  { %268 = vrot.lane.b32.xlu2 %v265_v15, %s667_s21 }
 0x6f5   :  { %v269_v17 = vpop.permute.xlu2 %268 }
 0x6f6   :  { %583 = vmatmul.msk.f32.vlgmr.msra.gmra.mxu1 %vm40_vm0, %v269_v17 }
 0x773   :  { %v289_v20 = vpop.f32.mrf.mxu1 }
 0x774   :  { %v290_v21 = vadd.f32 %v289_v20, %v92_v19 }
 0x776   :  { %v292_v22 = vmul.f32 0.5, %v290_v21 }
 0x778   :  { %v293_v23 = vsel %vm120_vm1, %v292_v22, %v290_v21 }
 0x779   :  { %615 = vtanh.f32 %v293_v23 }
 0x77f   :  { %v616_v24 = vpop.eup %615 }
 0x780   :  { %v295_v25 = vmul.f32 0.5, %v616_v24 }
 0x782   :  { %v296_v26 = vadd.f32 0.5, %v295_v25 }
 0x784   :  { %v297_v27 = vsel %vm120_vm1, %v296_v26, %v616_v24 }
 0x785   :  { %300 = vrot.lane.b32.xlu0 %v297_v27, %s666_s3  ;;  %v298_v30 = vmul.f32 %v297_v27, %v259_v9 }
 0x7f7   :  { %v301_v28 = vpop.permute.xlu0 %300 }
 0x7f8   :  { %v303_v29 = vmul.f32 %v301_v28, %v297_v27 }
 0x7fa   :  { %305 = vrot.lane.b32.xlu1 %v303_v29, %s666_s3 }
 0x86c   :  { %v306_v31 = vpop.permute.xlu1 %305 }
 0x86d   :  { %v308_v32 = vadd.f32 %v306_v31, %v298_v30 }
 0x86f   :  { %617 = vtanh.f32 %v308_v32 }
 0x875   :  { %v618_v33 = vpop.eup %617 }
 0x876   :  { %311 = vrot.lane.b32.xlu2 %v618_v33, %s666_s3 }
 0x8d0   :  { %v312_v34 = vpop.permute.xlu2 %311 }
 0x8d1   :  { %v314_v35 = vmul.f32 %v312_v34, %v297_v27 }
 0x8d3   :  { %317 = vrot.lane.b32.xlu0 %v314_v35, %s667_s21 }
 0x945   :  { %v318_v39 = vpop.permute.xlu0 %317 }
 0x946   :  { %584 = vmatmul.msk.f32.vlgmr.msra.gmra.mxu2 %vm40_vm0, %v318_v39 }
 0x9c9   :  { %v338_v42 = vpop.f32.mrf.mxu2 }
 0x9ca   :  { %v339_v43 = vadd.f32 %v338_v42, %v95_v41 }
 0x9cc   :  { %v341_v44 = vmul.f32 0.5, %v339_v43 }
 0x9ce   :  { %v342_v45 = vsel %vm120_vm1, %v341_v44, %v339_v43 }
 0x9cf   :  { %619 = vtanh.f32 %v342_v45 }
 0x9d5   :  { %v620_v46 = vpop.eup %619 }
 0x9d6   :  { %v344_v47 = vmul.f32 0.5, %v620_v46 }
 0x9d8   :  { %v345_v48 = vadd.f32 0.5, %v344_v47  ;;  %v514_v47 = vld [vmem:[%s920_s4 + $0x18] sm:$0xff] }
 0x9d9   :  { %536 = vmatpush.msra.mxu3 %v514_v47 }
 0x9da   :  { %v346_v49 = vsel %vm120_vm1, %v345_v48, %v620_v46  ;;  %v513_v48 = vld [vmem:[%s920_s4 + $0x10] sm:$0xff] }
 0x9db   :  { %349 = vrot.lane.b32.xlu1 %v346_v49, %s666_s3  ;;  %v347_v52 = vmul.f32 %v346_v49, %v308_v32  ;;  %v104_v32 = vadd.f32 %v773_v14, %v810_v38  ;;  %537 = vmatpush.msra.mxu3 %v513_v48 }
 0xa4d   :  { %v350_v50 = vpop.permute.xlu1 %349 }
 0xa4e   :  { %v352_v51 = vmul.f32 %v350_v50, %v346_v49  ;;  %v511_v50 = vld [vmem:[%s920_s4] sm:$0xff] }
 0xa50   :  { %354 = vrot.lane.b32.xlu2 %v352_v51, %s666_s3 }
 0xaaa   :  { %v355_v53 = vpop.permute.xlu2 %354 }
 0xaab   :  { %v357_v54 = vadd.f32 %v355_v53, %v347_v52 }
 0xaad   :  { %621 = vtanh.f32 %v357_v54 }
 0xab3   :  { %v622_v55 = vpop.eup %621 }
 0xab4   :  { %360 = vrot.lane.b32.xlu0 %v622_v55, %s666_s3 }
 0xb26   :  { %v361_v56 = vpop.permute.xlu0 %360 }
 0xb27   :  { %v363_v57 = vmul.f32 %v361_v56, %v346_v49  ;;  %v512_v49 = vld [vmem:[%s920_s4 + $0x8] sm:$0xff]  ;;  %s668_s4 = smov [#allocation3]  }
 0xb28   :  { %538 = vmatpush.msra.mxu3 %v512_v49  ;;  %s562_s1 = sshll.u32 %s668_s4, 4  ;;  %s563_s1 = int_to_ptr.vmem [resolvable:$true] %s562_s1 }
 0xb29   :  { %366 = vrot.lane.b32.xlu1 %v363_v57, %s667_s21 }
 0xb2a   :  { %539 = vmatpush.msra.mxu3 %v511_v50 }
 0xb9b   :  { %v367_v58 = vpop.permute.xlu1 %366 }
 0xb9c   :  { %585 = vmatmul.msk.f32.vlgmr.msrb.gmra.mxu3 %vm40_vm0, %v367_v58 }
 0xc1f   :  { %v387_v60 = vpop.f32.mrf.mxu3 }
 0xc20   :  { %v388_v61 = vadd.f32 %v387_v60, %v98_v59 }
 0xc22   :  { %v390_v62 = vmul.f32 0.5, %v388_v61 }
 0xc24   :  { %v391_v63 = vsel %vm120_vm1, %v390_v62, %v388_v61 }
 0xc25   :  { %623 = vtanh.f32 %v391_v63 }
 0xc2b   :  { %v624_v0 = vpop.eup %623 }
 0xc2c   :  { %v393_v1 = vmul.f32 0.5, %v624_v0 }
 0xc2e   :  { %v394_v2 = vadd.f32 0.5, %v393_v1 }
 0xc30   :  { %v395_v3 = vsel %vm120_vm1, %v394_v2, %v624_v0 }
 0xc31   :  { %398 = vrot.lane.b32.xlu2 %v395_v3, %s666_s3  ;;  %v396_v11 = vmul.f32 %v395_v3, %v357_v54  ;;  %v602_v54 = vld [vmem:[%s921_s5] ss:$0 sm:$0xff]  ;;  %s564_s5 = sshll.u32 %s922_s6, 4  ;;  %s565_s5 = int_to_ptr.hbm [resolvable:$true] %s564_s5 }
 0xc8b   :  { %v399_v4 = vpop.permute.xlu2 %398 }
 0xc8c   :  { %v401_v5 = vmul.f32 %v399_v4, %v395_v3 }
 0xc8e   :  { %403 = vrot.lane.b32.xlu0 %v401_v5, %s666_s3 }
 0xd00   :  { %v404_v6 = vpop.permute.xlu0 %403 }
 0xd01   :  { %v406_v7 = vadd.f32 %v404_v6, %v396_v11 }
 0xd03   :  { %625 = vtanh.f32 %v406_v7 }
 0xd09   :  { %v626_v8 = vpop.eup %625 }
 0xd0a   :  { %409 = vrot.lane.b32.xlu1 %v626_v8, %s666_s3 }
 0xd7c   :  { %v410_v9 = vpop.permute.xlu1 %409 }
 0xd7d   :  { %v412_v10 = vmul.f32 %v410_v9, %v395_v3 }
 0xd7f   :  { %415 = vrot.lane.b32.xlu2 %v412_v10, %s667_s21 }
 0xdd9   :  { %v416_v12 = vpop.permute.xlu2 %415 }
 0xdda   :  { %586 = vmatmul.msk.f32.vlgmr.msrb.gmra.mxu1 %vm40_vm0, %v416_v12 }
 0xe57   :  { %v436_v15 = vpop.f32.mrf.mxu1 }
 0xe58   :  { %v437_v17 = vadd.f32 %v436_v15, %v101_v13 }
 0xe5a   :  { %v439_v18 = vmul.f32 0.5, %v437_v17 }
 0xe5c   :  { %v440_v19 = vsel %vm120_vm1, %v439_v18, %v437_v17 }
 0xe5d   :  { %627 = vtanh.f32 %v440_v19 }
 0xe63   :  { %v628_v20 = vpop.eup %627 }
 0xe64   :  { %v442_v21 = vmul.f32 0.5, %v628_v20 }
 0xe66   :  { %v443_v22 = vadd.f32 0.5, %v442_v21 }
 0xe68   :  { %v444_v23 = vsel %vm120_vm1, %v443_v22, %v628_v20 }
 0xe69   :  { %447 = vrot.lane.b32.xlu0 %v444_v23, %s666_s3  ;;  %v445_v37 = vmul.f32 %v444_v23, %v406_v7 }
 0xedb   :  { %v448_v24 = vpop.permute.xlu0 %447 }
 0xedc   :  { %v450_v25 = vmul.f32 %v448_v24, %v444_v23 }
 0xede   :  { %452 = vrot.lane.b32.xlu1 %v450_v25, %s666_s3 }
 0xf50   :  { %v453_v26 = vpop.permute.xlu1 %452 }
 0xf51   :  { %v455_v27 = vadd.f32 %v453_v26, %v445_v37 }
 0xf53   :  { %629 = vtanh.f32 %v455_v27 }
 0xf59   :  { %v630_v28 = vpop.eup %629 }
 0xf5a   :  { %458 = vrot.lane.b32.xlu2 %v630_v28, %s666_s3 }
 0xfb4   :  { %v459_v29 = vpop.permute.xlu2 %458 }
 0xfb5   :  { %v461_v30 = vmul.f32 %v459_v29, %v444_v23 }
 0xfb7   :  { %464 = vrot.lane.b32.xlu0 %v461_v30, %s667_s21 }
0x1029   :  { %v465_v31 = vpop.permute.xlu0 %464 }
0x102a   :  { %587 = vmatmul.msk.f32.vlgmr.msrb.gmra.mxu2 %vm40_vm0, %v465_v31 }
0x10ad   :  { %v485_v33 = vpop.f32.mrf.mxu2 }
0x10ae   :  { %v486_v34 = vadd.f32 %v485_v33, %v104_v32 }
0x10b0   :  { %v488_v35 = vmul.f32 0.5, %v486_v34 }
0x10b2   :  { %v489_v36 = vsel %vm120_vm1, %v488_v35, %v486_v34 }
0x10b3   :  { %631 = vtanh.f32 %v489_v36 }
0x10b9   :  { %v632_v39 = vpop.eup %631 }
0x10ba   :  { %v491_v40 = vmul.f32 0.5, %v632_v39 }
0x10bc   :  { %v492_v41 = vadd.f32 0.5, %v491_v40 }
0x10be   :  { %v493_v42 = vsel %vm120_vm1, %v492_v41, %v632_v39 }
0x10bf   :  { %496 = vrot.lane.b32.xlu1 %v493_v42, %s666_s3  ;;  %v494_v14 = vmul.f32 %v493_v42, %v455_v27 }
0x1131   :  { %v497_v43 = vpop.permute.xlu1 %496 }
0x1132   :  { %v499_v44 = vmul.f32 %v497_v43, %v493_v42 }
0x1134   :  { %501 = vrot.lane.b32.xlu2 %v499_v44, %s666_s3 }
0x118e   :  { %v502_v38 = vpop.permute.xlu2 %501 }
0x118f   :  { %v504_v45 = vadd.f32 %v502_v38, %v494_v14 }
0x1191   :  { %633 = vtanh.f32 %v504_v45 }
0x1197   :  { %v634_v46 = vpop.eup %633 }
0x1198   :  { %507 = vrot.lane.b32.xlu0 %v634_v46, %s666_s3 }
0x120a   :  { %v508_v51 = vpop.permute.xlu0 %507 }
0x120b   :  { %v510_v52 = vmul.f32 %v508_v51, %v493_v42 }
0x120d   :  { %520 = vrot.lane.b32.xlu1 %v510_v52, %s667_s21 }
0x127f   :  { %v521_v53 = vpop.permute.xlu1 %520 }
0x1280   :  { %588 = vmatmul.msk.f32.vlgmr.msra.gmra.mxu3 %vm40_vm0, %v521_v53 }
0x1303   :  { %v541_v55 = vpop.f32.mrf.mxu3 }
0x1304   :  { %v542_v56 = vadd.f32 %v602_v54, %v541_v55 }
0x1306   :  { %v545_v57 = vsel %vm544_vm2, %v542_v56, -1e+30 }
0x1307   :  { %546 = vmax.xlane.f32.xlu2 %v545_v57 }
0x137a   :  { %v547_v58 = vpop.xlane.xlu2 %546 }
0x137b   :  { %v548_v59 = vsub.f32 %v545_v57, %v547_v58 }
0x137d   :  { %v549_v60 = vmul.f32 1.442695, %v548_v59 }
0x137f   :  { %635 = vpow2.f32 %v549_v60 }
0x1385   :  { %v636_v61 = vpop.eup %635 }
0x1386   :  { %551 = vadd.xlane.f32.xlu0 %v636_v61 }
0x13f9   :  { %v552_v62 = vpop.xlane.xlu0 %551 }
0x13fa   :  { %637 = vlog2.f32 %v552_v62 }
0x1400   :  { %v638_v63 = vpop.eup %637 }
0x1401   :  { %v554_v0 = vmul.f32 0.6931472, %v638_v63 }
0x1403   :  { %v555_v16 = vsub.f32 %v548_v59, %v554_v0 }
0x1405   :  { %556 = vst [vmem:[#allocation3] sm:$0xff] %v555_v16 }
0x1406   :  { %567 = dma.vmem_to_hbm [thread:$0]  %s563_s1, 128, %s565_s5, [#allocation4]  }
0x1407   :  { %663 = dma.done.wait [#allocation4], 128  }
0x1408   :  { %664 = vsyncadd [#allocation4], 4294967168 }
0x1409   :  { %572 = vsyncpa [#allocation4], 1 }

</bundles_post_ra>
